<compile_context>
chip_gen: v7x
topology: tpu7x:2x2x1
jax: 0.10.0
libtpu: 0.0.40
codegen_flags: <defaults>
</compile_context>

<pallas_src>
import jax
import jax.numpy as jnp
from jax import lax
from jax.experimental import pallas as pl
from jax.experimental.pallas import tpu as pltpu
import numpy as np

# ----------------------------- static config --------------------------------
B = 8                          # batch
EMB_IN = 32                    # params.embedding_size (decoder input width)
H1, H2 = 32, 64                # params.decoder_FC_size_list
SURV, CONT, BIN = 4, 3, 5      # survival / continuous / binary head widths
OUT = SURV + CONT + BIN        # decoder output width = 12
LANES = 128                    # lane-dense output width (padded)
EPS = 1e-5                     # BatchNorm1d default eps
DTYPE = jnp.float32

assert EMB_IN == H1            # residual path of FC block 1 requires this


# ------------------------------- kernel --------------------------------------
def decoder_kernel(x_ref, w1_ref, w2_ref, w3_ref, vec_ref, out_ref):
    # Packed per-channel table (one vreg):
    #   row 0: b1   row 1: s1   row 2: t1      (cols [0:H1])
    #   row 3: b2   row 4: s2   row 5: t2      (cols [0:H2])
    #   row 6: b3 with head-BN folded in       (cols [0:LANES], zero-padded)
    vecs = vec_ref[...]
    b1 = vecs[0:1, :H1]
    s1 = vecs[1:2, :H1]
    t1 = vecs[2:3, :H1]
    b2 = vecs[3:4, :H2]
    s2 = vecs[4:5, :H2]
    t2 = vecs[5:6, :H2]
    b3 = vecs[6:7, :]

    # out = F.relu(x)
    x = jnp.maximum(x_ref[...], 0.0)

    # ---- FullConnectedBlock 1: Linear -> ReLU -> (dropout: eval no-op) -> BN(+res)
    h = jnp.dot(x, w1_ref[...], preferred_element_type=jnp.float32) + b1
    h = jnp.maximum(h, 0.0)
    h = h * s1 + t1            # pre-folded eval BatchNorm
    h = h + x                  # residual (in_channels == out_channels)

    # ---- FullConnectedBlock 2: Linear -> ReLU -> BN (no residual, 32 != 64) ----
    h2 = jnp.dot(h, w2_ref[...], preferred_element_type=jnp.float32) + b2
    h2 = jnp.maximum(h2, 0.0)
    h2 = h2 * s2 + t2

    # ---- fc3 with head BN folded into w3/b3; lane-dense (B, 128) output ----
    o = jnp.dot(h2, w3_ref[...], preferred_element_type=jnp.float32) + b3

    # head: cols [0, SURV+CONT) pass through (BN already folded), the rest sigmoid.
    # Padding cols [OUT, 128) are sliced off in the wrapper.
    col = lax.broadcasted_iota(jnp.int32, o.shape, 1)
    out_ref[...] = jnp.where(col < SURV + CONT, o, jax.nn.sigmoid(o)).astype(out_ref.dtype)


# --------------------------- param folding (trace time) -----------------------
def fold_params(params):
    (w1, b1, g1, be1, m1, v1,
     w2, b2, g2, be2, m2, v2,
     w3, b3, gs, bes, ms, vs) = params

    # BN1 / BN2 eval affine: y = x*s + t
    s1 = g1 * lax.rsqrt(v1 + EPS)
    t1 = be1 - m1 * s1
    s2 = g2 * lax.rsqrt(v2 + EPS)
    t2 = be2 - m2 * s2

    # head BN (dense1_bn) folds directly into fc3 (no nonlinearity in between)
    ss = gs * lax.rsqrt(vs + EPS)                       # (1, OUT), first SURV valid
    col = jnp.arange(OUT)[None, :]
    scale = jnp.where(col < SURV, ss, 1.0)              # (1, OUT)
    shift = jnp.where(col < SURV, bes - ms * ss, 0.0)   # (1, OUT)
    w3f = w3 * scale                                    # (H2, OUT)
    b3f = b3 * scale + shift                            # (1, OUT)

    # lane-dense fc3: pad output dim to 128
    w3p = jnp.zeros((H2, LANES), DTYPE).at[:, :OUT].set(w3f)

    # pack all per-channel vectors into one (8, 128) table (one vreg, one DMA)
    vec = jnp.zeros((8, LANES), DTYPE)
    vec = vec.at[0, :H1].set(b1[0]).at[1, :H1].set(s1[0]).at[2, :H1].set(t1[0])
    vec = vec.at[3, :H2].set(b2[0]).at[4, :H2].set(s2[0]).at[5, :H2].set(t2[0])
    vec = vec.at[6, :OUT].set(b3f[0])
    return w1, w2, w3p, vec


# ------------------------------- wrapper --------------------------------------
def output_layer_forward(x, params):
    w1, w2, w3p, vec = fold_params(params)
    vmem_spec = pl.BlockSpec(memory_space=pltpu.MemorySpace.VMEM)
    nbytes = 4 * (x.size + w1.size + w2.size + w3p.size + vec.size + B * LANES)
    out_padded = pl.pallas_call(
        decoder_kernel,
        out_shape=jax.ShapeDtypeStruct((x.shape[0], LANES), DTYPE),
        in_specs=[vmem_spec] * 5,
        out_specs=vmem_spec,
        cost_estimate=pl.CostEstimate(
            flops=2 * B * (EMB_IN * H1 + H1 * H2 + H2 * LANES),
            transcendentals=B * LANES,
            bytes_accessed=nbytes),
    )(x, w1, w2, w3p, vec)
    return out_padded[:, :OUT]


# --------------------------- pure-JAX reference --------------------------------
def reference_forward(x, params):
    (w1, b1, g1, be1, m1, v1,
     w2, b2, g2, be2, m2, v2,
     w3, b3, gs, bes, ms, vs) = params
    out = jnp.maximum(x, 0.0)
    h = jnp.maximum(out @ w1 + b1, 0.0)
    h = (h - m1) / jnp.sqrt(v1 + EPS) * g1 + be1
    h = h + out
    h2 = jnp.maximum(h @ w2 + b2, 0.0)
    h2 = (h2 - m2) / jnp.sqrt(v2 + EPS) * g2 + be2
    o = h2 @ w3 + b3
    surv = (o[:, :SURV] - ms[:, :SURV]) / jnp.sqrt(vs[:, :SURV] + EPS) * gs[:, :SURV] + bes[:, :SURV]
    cont = o[:, SURV:SURV + CONT]
    binp = jax.nn.sigmoid(o[:, SURV + CONT:])
    return jnp.concatenate([surv, cont, binp], axis=1)


# ------------------------------ param init ------------------------------------
def make_params(key):
    ks = jax.random.split(key, 20)

    def lin(kw, kb, fan_in, fan_out):
        w = jax.random.normal(kw, (fan_in, fan_out), DTYPE) * 0.1
        b = jax.random.normal(kb, (1, fan_out), DTYPE) * 0.05
        return w, b

    def bn(kg, kb, km, kv, width, pad_to=None):
        pad_to = width if pad_to is None else pad_to
        g = jnp.ones((1, pad_to), DTYPE).at[:, :width].set(
            1.0 + 0.1 * jax.random.normal(kg, (width,), DTYPE))
        be = jnp.zeros((1, pad_to), DTYPE).at[:, :width].set(
            0.1 * jax.random.normal(kb, (width,), DTYPE))
        m = jnp.zeros((1, pad_to), DTYPE).at[:, :width].set(
            0.1 * jax.random.normal(km, (width,), DTYPE))
        v = jnp.ones((1, pad_to), DTYPE).at[:, :width].set(
            0.5 + jnp.abs(jax.random.normal(kv, (width,), DTYPE)))
        return g, be, m, v

    w1, b1 = lin(ks[0], ks[1], EMB_IN, H1)
    g1, be1, m1, v1 = bn(ks[2], ks[3], ks[4], ks[5], H1)
    w2, b2 = lin(ks[6], ks[7], H1, H2)
    g2, be2, m2, v2 = bn(ks[8], ks[9], ks[10], ks[11], H2)
    w3, b3 = lin(ks[12], ks[13], H2, OUT)
    # dense1_bn on the survival slice; padded to OUT width (masked in fold)
    gs, bes, ms, vs = bn(ks[14], ks[15], ks[16], ks[17], SURV, pad_to=OUT)
    return (w1, b1, g1, be1, m1, v1,
            w2, b2, g2, be2, m2, v2,
            w3, b3, gs, bes, ms, vs)


if __name__ == "__main__":
    key = jax.random.PRNGKey(0)
    kx, kp = jax.random.split(key)
    x = jax.random.normal(kx, (B, EMB_IN), DTYPE)
    params = make_params(kp)

    out = output_layer_forward(x, params)
    out = jax.block_until_ready(out)

    ref = reference_forward(x, params)
    np.testing.assert_allclose(np.asarray(out), np.asarray(ref), rtol=1e-4, atol=1e-5)
    assert out.shape == (B, OUT)
    print("KERNEL_OK")
</pallas_src>

<mosaic_0001>
module attributes {stable_mosaic.version = 11 : i64} {
  func.func @decoder_kernel(%arg0: memref<8x32xf32, #tpu.memory_space<vmem>>, %arg1: memref<32x32xf32, #tpu.memory_space<vmem>>, %arg2: memref<32x64xf32, #tpu.memory_space<vmem>>, %arg3: memref<64x128xf32, #tpu.memory_space<vmem>>, %arg4: memref<8x128xf32, #tpu.memory_space<vmem>>, %arg5: memref<8x128xf32, #tpu.memory_space<vmem>>) attributes {dimension_semantics = [], scalar_prefetch = 0 : i64, scratch_operands = 0 : i64, tpu.core_type = #tpu.core_type<tc>} {
    %c0 = arith.constant 0 : index
    %c0_0 = arith.constant 0 : index
    %0 = vector.load %arg4[%c0, %c0_0] : memref<8x128xf32, #tpu.memory_space<vmem>>, vector<8x128xf32>
    %1 = vector.extract_strided_slice %0 {offsets = [0, 0], sizes = [1, 32], strides = [1, 1]} : vector<8x128xf32> to vector<1x32xf32>
    %2 = vector.extract_strided_slice %0 {offsets = [1, 0], sizes = [1, 32], strides = [1, 1]} : vector<8x128xf32> to vector<1x32xf32>
    %3 = vector.extract_strided_slice %0 {offsets = [2, 0], sizes = [1, 32], strides = [1, 1]} : vector<8x128xf32> to vector<1x32xf32>
    %4 = vector.extract_strided_slice %0 {offsets = [3, 0], sizes = [1, 64], strides = [1, 1]} : vector<8x128xf32> to vector<1x64xf32>
    %5 = vector.extract_strided_slice %0 {offsets = [4, 0], sizes = [1, 64], strides = [1, 1]} : vector<8x128xf32> to vector<1x64xf32>
    %6 = vector.extract_strided_slice %0 {offsets = [5, 0], sizes = [1, 64], strides = [1, 1]} : vector<8x128xf32> to vector<1x64xf32>
    %7 = vector.extract_strided_slice %0 {offsets = [6, 0], sizes = [1, 128], strides = [1, 1]} : vector<8x128xf32> to vector<1x128xf32>
    %c0_1 = arith.constant 0 : index
    %c0_2 = arith.constant 0 : index
    %8 = vector.load %arg0[%c0_1, %c0_2] : memref<8x32xf32, #tpu.memory_space<vmem>>, vector<8x32xf32>
    %cst = arith.constant 0.000000e+00 : f32
    %9 = vector.broadcast %cst : f32 to vector<8x32xf32>
    %10 = arith.maximumf %8, %9 : vector<8x32xf32>
    %c0_3 = arith.constant 0 : index
    %c0_4 = arith.constant 0 : index
    %11 = vector.load %arg1[%c0_3, %c0_4] : memref<32x32xf32, #tpu.memory_space<vmem>>, vector<32x32xf32>
    %cst_5 = arith.constant dense<0.000000e+00> : vector<8x32xf32>
    %12 = tpu.matmul %10, %11, %cst_5 {dimension_numbers = #tpu.dot_dimension_numbers<[1], [0], [0], [1], [0, 0, 1, 1], [], []>} : vector<8x32xf32>, vector<32x32xf32>, vector<8x32xf32> -> vector<8x32xf32>
    %13 = vector.broadcast %1 : vector<1x32xf32> to vector<8x32xf32>
    %14 = arith.addf %12, %13 : vector<8x32xf32>
    %cst_6 = arith.constant 0.000000e+00 : f32
    %15 = vector.broadcast %cst_6 : f32 to vector<8x32xf32>
    %16 = arith.maximumf %14, %15 : vector<8x32xf32>
    %17 = vector.broadcast %2 : vector<1x32xf32> to vector<8x32xf32>
    %18 = arith.mulf %16, %17 : vector<8x32xf32>
    %19 = vector.broadcast %3 : vector<1x32xf32> to vector<8x32xf32>
    %20 = arith.addf %18, %19 : vector<8x32xf32>
    %21 = arith.addf %20, %10 : vector<8x32xf32>
    %c0_7 = arith.constant 0 : index
    %c0_8 = arith.constant 0 : index
    %22 = vector.load %arg2[%c0_7, %c0_8] : memref<32x64xf32, #tpu.memory_space<vmem>>, vector<32x64xf32>
    %cst_9 = arith.constant dense<0.000000e+00> : vector<8x64xf32>
    %23 = tpu.matmul %21, %22, %cst_9 {dimension_numbers = #tpu.dot_dimension_numbers<[1], [0], [0], [1], [0, 0, 1, 1], [], []>} : vector<8x32xf32>, vector<32x64xf32>, vector<8x64xf32> -> vector<8x64xf32>
    %24 = vector.broadcast %4 : vector<1x64xf32> to vector<8x64xf32>
    %25 = arith.addf %23, %24 : vector<8x64xf32>
    %cst_10 = arith.constant 0.000000e+00 : f32
    %26 = vector.broadcast %cst_10 : f32 to vector<8x64xf32>
    %27 = arith.maximumf %25, %26 : vector<8x64xf32>
    %28 = vector.broadcast %5 : vector<1x64xf32> to vector<8x64xf32>
    %29 = arith.mulf %27, %28 : vector<8x64xf32>
    %30 = vector.broadcast %6 : vector<1x64xf32> to vector<8x64xf32>
    %31 = arith.addf %29, %30 : vector<8x64xf32>
    %c0_11 = arith.constant 0 : index
    %c0_12 = arith.constant 0 : index
    %32 = vector.load %arg3[%c0_11, %c0_12] : memref<64x128xf32, #tpu.memory_space<vmem>>, vector<64x128xf32>
    %cst_13 = arith.constant dense<0.000000e+00> : vector<8x128xf32>
    %33 = tpu.matmul %31, %32, %cst_13 {dimension_numbers = #tpu.dot_dimension_numbers<[1], [0], [0], [1], [0, 0, 1, 1], [], []>} : vector<8x64xf32>, vector<64x128xf32>, vector<8x128xf32> -> vector<8x128xf32>
    %34 = vector.broadcast %7 : vector<1x128xf32> to vector<8x128xf32>
    %35 = arith.addf %33, %34 : vector<8x128xf32>
    %36 = tpu.iota {dimensions = array<i32: 1>} : vector<8x128xi32>
    %c7_i32 = arith.constant 7 : i32
    %37 = vector.broadcast %c7_i32 : i32 to vector<8x128xi32>
    %38 = arith.cmpi slt, %36, %37 : vector<8x128xi32>
    %39 = arith.negf %35 : vector<8x128xf32>
    %40 = math.exp %39 : vector<8x128xf32>
    %cst_14 = arith.constant 1.000000e+00 : f32
    %41 = vector.broadcast %cst_14 : f32 to vector<8x128xf32>
    %42 = arith.addf %41, %40 : vector<8x128xf32>
    %43 = arith.divf %41, %42 : vector<8x128xf32>
    %44 = arith.select %38, %35, %43 : vector<8x128xi1>, vector<8x128xf32>
    %c0_15 = arith.constant 0 : index
    %c0_16 = arith.constant 0 : index
    %45 = vector.load %arg5[%c0_15, %c0_16] : memref<8x128xf32, #tpu.memory_space<vmem>>, vector<8x128xf32>
    tpu.vector_store %arg5[%c0_15, %c0_16], %44 {strides = array<i32>} : memref<8x128xf32, #tpu.memory_space<vmem>>, vector<8x128xf32>,
    return
  }
}

</mosaic_0001>

<bundles_post_ra>
// kernel: tpu_custom_call.1
= control target key start
LH: loop header
LB: loop body
LE: loop exit
PB: predicated region body
PF: predicated region fallthrough
CT: control target
= control target key end

     0   :  { %10 = vsyncpa [#allocation3], 0  ;;  %s714_s0 = inlined_call_operand.hbm [shape: f32[8,32], index: 0, kind: input, shape index: {}]   ;;  %s715_s1 = inlined_call_operand.hbm [shape: f32[32,32], index: 1, kind: input, shape index: {}]   ;;  %s716_s2 = inlined_call_operand.hbm [shape: f32[32,64], index: 2, kind: input, shape index: {}]   ;;  %s717_s3 = inlined_call_operand.hbm [shape: f32[64,128], index: 3, kind: input, shape index: {}]   ;;  %s718_s4 = inlined_call_operand.vmem [shape: f32[8,128], index: 4, kind: input, shape index: {}]   ;;  %s719_s5 = inlined_call_operand.hbm [shape: f32[8,128], index: 5, kind: output, shape index: {}]  }
   0x1   :  { %11 = vsyncpa [#allocation6], 0 }
   0x2   :  { %12 = vsyncpa [#allocation9], 0 }
   0x3   :  { %13 = vsyncpa [#allocation4], 0  ;;  %s597_s18 = smov [#allocation5]   ;;  %s479_s22 = scalar_lea.hbm %s715_s1, 512 }
   0x4   :  { %s29_s19 = sshll.u32 %s597_s18, 4  ;;  %p480_p0 = scmp.ne.s32.totalorder %s715_s1, %s479_s22  ;;  %s30_s19 = int_to_ptr.vmem [resolvable:$true] %s29_s19 }
   0x5   :  { %p483_p1 = scmp.lt.u32.totalorder %s479_s22, %s715_s1 }
   0x7   :  { %p485_p2 = pnand %p483_p1, %p480_p0 }
   0x9   :  { %488 = shalt.err (!%p485_p2)
}
   0xa   :  { %s489_s27 = scalar_lea.vmem %s30_s19, 512  ;;  %p494_p4 = scmp.lt.s32.totalorder %s30_s19, %s30_s19 }
   0xb   :  { %p490_p3 = scmp.ne.s32.totalorder %s30_s19, %s489_s27  ;;  %p495_p5 = scmp.lt.s32.totalorder %s489_s27, %s489_s27 }
   0xd   :  { %p496_p6 = por %p495_p5, %p494_p4 }
   0xf   :  { %p497_p7 = pnand %p496_p6, %p490_p3 }
  0x11   :  { %500 = shalt.err (!%p497_p7)
}
  0x12   :  { %s598_s28 = smov 128   ;;  %s599_s29 = smov 8  }
  0x13   :  { %35 = dma.hbm_to_vmem [thread:$0]  %s715_s1, 512, %s30_s19, [#allocation6], %s598_s28, %s598_s28, %s599_s29  }
  0x14   :  { %s600_s7 = smov [#allocation2]   ;;  %s601_s9 = smov [#allocation7]  }
  0x15   :  { %s20_s8 = sshll.u32 %s600_s7, 4  ;;  %s41_s10 = sshll.u32 %s601_s9, 4  ;;  %s21_s8 = int_to_ptr.vmem [resolvable:$true] %s20_s8  ;;  %s42_s10 = int_to_ptr.vmem [resolvable:$true] %s41_s10 }
  0x16   :  { %s501_s13 = scalar_lea.hbm %s714_s0, 128 }
  0x17   :  { %p502_p8 = scmp.ne.s32.totalorder %s714_s0, %s501_s13  ;;  %p505_p9 = scmp.lt.u32.totalorder %s501_s13, %s714_s0 }
  0x19   :  { %p507_p10 = pnand %p505_p9, %p502_p8 }
  0x1b   :  { %510 = shalt.err (!%p507_p10)
}
  0x1c   :  { %s511_s1 = scalar_lea.vmem %s21_s8, 128  ;;  %p516_p12 = scmp.lt.s32.totalorder %s21_s8, %s21_s8 }
  0x1d   :  { %p512_p11 = scmp.ne.s32.totalorder %s21_s8, %s511_s1  ;;  %p517_p13 = scmp.lt.s32.totalorder %s511_s1, %s511_s1 }
  0x1f   :  { %p518_p0 = por %p517_p13, %p516_p12 }
  0x21   :  { %p519_p1 = pnand %p518_p0, %p512_p11 }
  0x23   :  { %522 = shalt.err (!%p519_p1)
}
  0x24   :  { %23 = dma.hbm_to_vmem [thread:$0]  %s714_s0, 128, %s21_s8, [#allocation3]  }
  0x25   :  { %s523_s22 = scalar_lea.hbm %s716_s2, 512 }
  0x26   :  { %p524_p2 = scmp.ne.s32.totalorder %s716_s2, %s523_s22  ;;  %p527_p3 = scmp.lt.u32.totalorder %s523_s22, %s716_s2 }
  0x28   :  { %p529_p4 = pnand %p527_p3, %p524_p2 }
  0x2a   :  { %532 = shalt.err (!%p529_p4)
}
  0x2b   :  { %s533_s27 = scalar_lea.vmem %s42_s10, 512  ;;  %p538_p6 = scmp.lt.s32.totalorder %s42_s10, %s42_s10 }
  0x2c   :  { %p534_p5 = scmp.ne.s32.totalorder %s42_s10, %s533_s27  ;;  %p539_p7 = scmp.lt.s32.totalorder %s533_s27, %s533_s27 }
  0x2e   :  { %p540_p8 = por %p539_p7, %p538_p6 }
  0x30   :  { %p541_p9 = pnand %p540_p8, %p534_p5 }
  0x32   :  { %544 = shalt.err (!%p541_p9)
}
  0x33   :  { %47 = dma.hbm_to_vmem [thread:$0]  %s716_s2, 512, %s42_s10, [#allocation6], %s598_s28, %s598_s28, %s599_s29  }
  0x34   :  { %s602_s6 = smov [#allocation8]   ;;  %s545_s11 = scalar_lea.hbm %s717_s3, 1024 }
  0x35   :  { %s53_s7 = sshll.u32 %s602_s6, 4  ;;  %p546_p10 = scmp.ne.s32.totalorder %s717_s3, %s545_s11  ;;  %s54_s7 = int_to_ptr.vmem [resolvable:$true] %s53_s7 }
  0x36   :  { %p549_p11 = scmp.lt.u32.totalorder %s545_s11, %s717_s3 }
  0x38   :  { %p551_p12 = pnand %p549_p11, %p546_p10 }
  0x3a   :  { %554 = shalt.err (!%p551_p12)
}
  0x3b   :  { %s555_s16 = scalar_lea.vmem %s54_s7, 1024  ;;  %p560_p0 = scmp.lt.s32.totalorder %s54_s7, %s54_s7 }
  0x3c   :  { %p556_p13 = scmp.ne.s32.totalorder %s54_s7, %s555_s16  ;;  %p561_p1 = scmp.lt.s32.totalorder %s555_s16, %s555_s16 }
  0x3e   :  { %p562_p2 = por %p561_p1, %p560_p0 }
  0x40   :  { %p563_p3 = pnand %p562_p2, %p556_p13 }
  0x42   :  { %566 = shalt.err (!%p563_p3)
}
  0x43   :  { %59 = dma.hbm_to_vmem [thread:$0]  %s717_s3, 1024, %s54_s7, [#allocation9], %s598_s28, %s598_s28, %s599_s29  }
  0x44   :  { %589 = dma.done.wait [#allocation3], 128  }
  0x45   :  { %590 = vsyncadd [#allocation3], 4294967168 }
  0x46   :  { %591 = dma.done.wait [#allocation6], 1024  }
  0x47   :  { %592 = vsyncadd [#allocation6], 4294966272 }
  0x48   :  { %593 = dma.done.wait [#allocation9], 1024  }
  0x49   :  { %594 = vsyncadd [#allocation9], 4294966272  ;;  %v603_v0 = vmov 0.0|0.0   ;;  %vm604_vm0 = vmmov 0   ;;  %v605_v1 = vmov 0.0   ;;  %v77_v2 = vld [vmem:[#allocation5] sm:$0xff]  ;;  %v81_v22 = vlaneseq }
  0x4a   :  { %441 = vmatprep.subr.bf16.mxu1 %v603_v0  ;;  %408 = vmatprep.mubr.msk.f32.mxu1 %vm604_vm0, %v605_v1  ;;  %v78_v3 = vld [vmem:[#allocation5 + $0x8] sm:$0xff]  ;;  %v79_v4 = vld [vmem:[#allocation5 + $0x10] sm:$0xff]  ;;  %v80_v6 = vld [vmem:[#allocation5 + $0x18] sm:$0xff]  ;;  %vm85_vm1 = vcmask 261120   ;;  %vm275_vm2 = vcmask 523264  }
  0x4b   :  { %453 = vmatprep.subr.bf16.mxu0 %v603_v0  ;;  %438 = vmatprep.mubr.msk.f32.mxu0 %vm604_vm0, %v605_v1  ;;  %v442_v5 = vpack.c.bf16 %v78_v3, %v77_v2  ;;  %v445_v7 = vpack.c.bf16 %v80_v6, %v79_v4  ;;  %v75_v8 = vld [vmem:[#allocation2] sm:$0xff]  ;;  %v171_v10 = vld [vmem:[#allocation7] sm:$0xff]  ;;  %v172_v11 = vld [vmem:[#allocation7 + $0x8] sm:$0xff]  ;;  %v82_v23 = vshrl.u32 %v81_v22, 7 }
  0x4c   :  { %v76_v9 = vmax.f32 %v75_v8, 0.0  ;;  %v448_v12 = vpack.c.bf16 %v172_v11, %v171_v10  ;;  %v173_v13 = vld [vmem:[#allocation7 + $0x10] sm:$0xff]  ;;  %v174_v14 = vld [vmem:[#allocation7 + $0x18] sm:$0xff]  ;;  %v263_v16 = vld [vmem:[#allocation8] sm:$0xff] }
  0x4d   :  { %443 = vmatpush3.bf16.msra.mxu1 %v442_v5  ;;  %v451_v15 = vpack.c.bf16 %v174_v14, %v173_v13  ;;  %v264_v17 = vld [vmem:[#allocation8 + $0x8] sm:$0xff]  ;;  %v265_v18 = vld [vmem:[#allocation8 + $0x10] sm:$0xff]  ;;  %v266_v20 = vld [vmem:[#allocation8 + $0x18] sm:$0xff]  ;;  %v83_v24 = vsub.s32 0, %v82_v23  ;;  %v162_v27 = vsub.s32 1, %v82_v23  ;;  %v167_v28 = vsub.s32 2, %v82_v23 }
  0x4e   :  { %444 = vmatprep.subr.bf16.mxu1 %v603_v0  ;;  %v454_v19 = vpack.c.bf16 %v264_v17, %v263_v16  ;;  %v457_v21 = vpack.c.bf16 %v266_v20, %v265_v18  ;;  %v74_v25 = vld [vmem:[%s718_s4] sm:$0xff]  ;;  %v267_v38 = vld [vmem:[#allocation8 + $0x20] sm:$0xff]  ;;  %v268_v39 = vld [vmem:[#allocation8 + $0x28] sm:$0xff]  ;;  %v177_v44 = vsub.s32 3, %v82_v23  ;;  %v255_v46 = vsub.s32 4, %v82_v23  ;;  %s606_s4 = smov [#allocation10]  }
  0x4f   :  { %v84_v26 = vrot.slane %v74_v25, %v83_v24  ;;  %v163_v31 = vrot.slane %v74_v25, %v162_v27  ;;  %v168_v34 = vrot.slane %v74_v25, %v167_v28  ;;  %v460_v40 = vpack.c.bf16 %v268_v39, %v267_v38  ;;  %v269_v41 = vld [vmem:[#allocation8 + $0x30] sm:$0xff]  ;;  %v270_v42 = vld [vmem:[#allocation8 + $0x38] sm:$0xff]  ;;  %s366_s29 = sshll.u32 %s606_s4, 4  ;;  %s367_s29 = int_to_ptr.vmem [resolvable:$true] %s366_s29 }
  0x50   :  { %455 = vmatpush3.bf16.msra.mxu0 %v454_v19  ;;  %v463_v43 = vpack.c.bf16 %v270_v42, %v269_v41  ;;  %v178_v45 = vrot.slane %v74_v25, %v177_v44  ;;  %v260_v47 = vsub.s32 5, %v82_v23  ;;  %v256_v50 = vrot.slane %v74_v25, %v255_v46  ;;  %s567_s17 = scalar_lea.vmem %s367_s29, 128  ;;  %p572_p5 = scmp.lt.s32.totalorder %s367_s29, %s367_s29 }
  0x51   :  { %446 = vmatpush3.bf16.msra.mxu1 %v445_v7  ;;  %456 = vmatprep.subr.bf16.mxu0 %v603_v0  ;;  %v273_v56 = vsub.s32 6, %v82_v23  ;;  %p568_p4 = scmp.ne.s32.totalorder %s367_s29, %s567_s17  ;;  %p573_p6 = scmp.lt.s32.totalorder %s567_s17, %s567_s17 }
  0x52   :  { %447 = vmatprep.subr.bf16.mxu1 %v603_v0  ;;  %v261_v53 = vrot.slane %v74_v25, %v260_v47 }
  0x53   :  { %v274_v57 = vrot.slane %v74_v25, %v273_v56  ;;  %p574_p7 = por %p573_p6, %p572_p5 }
  0x54   :  { %409 = vmatmul.mubr.msk.f32.vlgmr.msra.gmra.mrb[0].mxu1 %vm85_vm1, %v76_v9  ;;  %458 = vmatpush3.bf16.msra.mxu0 %v457_v21 }
  0x55   :  { %419 = vmatprep.mubr.msk.f32.mxu1 %vm604_vm0, %v605_v1  ;;  %449 = vmatpush3.bf16.msra.mxu1 %v448_v12  ;;  %p575_p8 = pnand %p574_p7, %p568_p4 }
  0x56   :  { %450 = vmatprep.subr.bf16.mxu1 %v603_v0  ;;  %459 = vmatprep.subr.bf16.mxu0 %v603_v0 }
  0x58   :  { %461 = vmatpush3.bf16.msra.mxu0 %v460_v40 }
  0x59   :  { %452 = vmatpush3.bf16.msra.mxu1 %v451_v15  ;;  %462 = vmatprep.subr.bf16.mxu0 %v603_v0  ;;  %v350_v0 = vand.u32 127, %v81_v22 }
  0x5b   :  { %vm351_vm3 = vcmp.lt.s32.totalorder %v350_v0, 7 }
  0x5c   :  { %464 = vmatpush3.bf16.msra.mxu0 %v463_v43 }
 0x127   :  { %v155_v29 = vpop.f32.mrb[0].mxu1 }
 0x128   :  { %v156_v30 = vadd.f32 %v155_v29, %v84_v26  ;;  %v410_v32 = vpop.f32.mrb[1].mxu1 }
 0x12a   :  { %v159_v33 = vmax.f32 %v156_v30, 0.0 }
 0x12c   :  { %v164_v35 = vmul.f32 %v163_v31, %v159_v33 }
 0x12e   :  { %v169_v36 = vadd.f32 %v168_v34, %v164_v35 }
 0x130   :  { %v170_v37 = vadd.f32 %v169_v36, %v76_v9 }
 0x132   :  { %420 = vmatmul.mubr.msk.f32.vlgmr.msra.gmra.mrb[2].mxu1 %vm85_vm1, %v170_v37 }
 0x205   :  { %v248_v48 = vpop.f32.mrb[2].mxu1 }
 0x206   :  { %v249_v49 = vadd.f32 %v248_v48, %v178_v45  ;;  %v421_v51 = vpop.f32.mrb[3].mxu1 }
 0x208   :  { %v252_v52 = vmax.f32 %v249_v49, 0.0 }
 0x20a   :  { %v257_v54 = vmul.f32 %v256_v50, %v252_v52 }
 0x20c   :  { %v262_v55 = vadd.f32 %v261_v53, %v257_v54 }
 0x20e   :  { %439 = vmatmul.mubr.msk.f32.vlgmr.msra.gmra.mrb[0].mxu0 %vm275_vm2, %v262_v55 }
 0x2e1   :  { %v345_v58 = vpop.f32.mrb[0].mxu0 }
 0x2e2   :  { %v346_v59 = vadd.f32 %v345_v58, %v274_v57  ;;  %v440_v60 = vpop.f32.mrb[1].mxu0 }
 0x2e4   :  { %v380_v61 = vmul.f32 -1.442695, %v346_v59 }
 0x2e6   :  { %475 = vpow2.f32 %v380_v61 }
 0x2f0   :  { %v476_v62 = vpop.eup %475 }
 0x2f1   :  { %v355_v63 = vadd.f32 1.0, %v476_v62 }
 0x2f3   :  { %477 = vrcp.f32 %v355_v63 }
 0x2fd   :  { %v478_v1 = vpop.eup %477 }
 0x2fe   :  { %v358_v2 = vsel %vm351_vm3, %v346_v59, %v478_v1 }
 0x2ff   :  { %359 = vst [vmem:[#allocation10] sm:$0xff] %v358_v2 }
 0x300   :  { %578 = shalt.err (!%p575_p8)
}
 0x301   :  { %s579_s19 = scalar_lea.hbm %s719_s5, 128 }
 0x302   :  { %p580_p9 = scmp.ne.s32.totalorder %s719_s5, %s579_s19  ;;  %p583_p10 = scmp.lt.u32.totalorder %s579_s19, %s719_s5 }
 0x304   :  { %p585_p11 = pnand %p583_p10, %p580_p9 }
 0x306   :  { %588 = shalt.err (!%p585_p11)
}
 0x307   :  { %369 = dma.vmem_to_hbm [thread:$0]  %s367_s29, 128, %s719_s5, [#allocation4]  }
 0x308   :  { %595 = dma.done.wait [#allocation4], 128  }
 0x309   :  { %596 = vsyncadd [#allocation4], 4294967168 }
 0x30a   :  { %373 = vsyncpa [#allocation3], 1 }
 0x30b   :  { %374 = vsyncpa [#allocation6], 1 }
 0x30c   :  { %375 = vsyncpa [#allocation9], 1 }
 0x30d   :  { %376 = vsyncpa [#allocation4], 1 }

</bundles_post_ra>
